<compile_context>
chip_gen: v7x
topology: tpu7x:2x2x1
jax: 0.10.0
libtpu: 0.0.40
codegen_flags: <defaults>
</compile_context>

<pallas_src>
import jax
import jax.numpy as jnp
from jax.experimental import pallas as pl
from jax.experimental.pallas import tpu as pltpu

_LANES = 128
_SUBLANES = 8


def _mse_partial_kernel(x_ref, t_ref, part_ref, acc_ref):
    """Accumulate (x - t)^2 elementwise in a VMEM slab; one reduce per split."""
    i = pl.program_id(1)

    @pl.when(i == 0)
    def _():
        acc_ref[...] = jnp.zeros_like(acc_ref)

    d = x_ref[...].astype(jnp.float32) - t_ref[...].astype(jnp.float32)
    acc_ref[...] += d * d  # pure VPU work, hidden under the HBM DMA

    @pl.when(i == pl.num_programs(1) - 1)
    def _():
        # Single tree reduce of this split's accumulator; broadcast the scalar
        # into a layout-friendly (8, 128) output block (unmasked full-vreg store).
        s = jnp.sum(acc_ref[...])
        part_ref[...] = jnp.full((_SUBLANES, _LANES), s, dtype=jnp.float32)


def _round_up(a, b):
    return ((a + b - 1) // b) * b


def _as_slab(a, rows, pad):
    """Flatten to (rows, 128); zero-pad the tail only when required."""
    flat = a.reshape(-1)
    if pad:
        flat = jnp.pad(flat, (0, pad))
    return flat.reshape(rows, _LANES)


def content_loss_forward(x, target, *, target_block_rows=2048, num_splits=2):
    """ContentLoss.forward: returns (input unchanged, mse_loss(input, target))."""
    assert x.shape == target.shape, "input / target shape mismatch"
    n = x.size
    rows_needed = pl.cdiv(n, _LANES)

    # Largest sensible tile for this input, rounded to the sublane granule and
    # capped at ~1 MiB per f32 tile (2 inputs x 2 buffers + acc ~= 5 MiB VMEM).
    block_rows = min(
        target_block_rows,
        _round_up(max(1, pl.cdiv(rows_needed, num_splits)), _SUBLANES),
    )
    rows = _round_up(rows_needed, num_splits * block_rows)
    steps = rows // (num_splits * block_rows)

    pad = rows * _LANES - n
    # Pad BOTH operands identically with zeros -> padded elements contribute
    # exactly 0 to the sum of squared differences.
    xf = _as_slab(x, rows, pad)
    tf = _as_slab(target, rows, pad)

    partials = pl.pallas_call(
        _mse_partial_kernel,
        out_shape=jax.ShapeDtypeStruct((num_splits * _SUBLANES, _LANES), jnp.float32),
        grid_spec=pltpu.PrefetchScalarGridSpec(
            num_scalar_prefetch=0,
            grid=(num_splits, steps),
            in_specs=[
                pl.BlockSpec((block_rows, _LANES), lambda c, i: (c * steps + i, 0)),
                pl.BlockSpec((block_rows, _LANES), lambda c, i: (c * steps + i, 0)),
            ],
            out_specs=pl.BlockSpec((_SUBLANES, _LANES), lambda c, i: (c, 0)),
            scratch_shapes=[pltpu.VMEM((block_rows, _LANES), jnp.float32)],
        ),
        compiler_params=pltpu.CompilerParams(
            # Split axis may shard across TensorCores (v7x megacore); the inner
            # axis is a sequential reduction with a resident accumulator/output.
            dimension_semantics=("parallel", "arbitrary"),
        ),
    )(xf, tf)

    per_split = partials.reshape(num_splits, _SUBLANES, _LANES)[:, 0, 0]
    loss = jnp.sum(per_split) / jnp.float32(n)

    # ContentLoss returns its input unchanged (the loss is stashed on the module
    # in PyTorch; here it is returned explicitly instead).
    return x, loss


if __name__ == "__main__":
    key = jax.random.PRNGKey(0)
    k_in, k_tgt, k_in2, k_tgt2 = jax.random.split(key, 4)

    # Primary case: NCHW, small shapes, exactly matching the module's intent.
    B, C, H, W = 2, 4, 16, 16
    x = jax.random.normal(k_in, (B, C, H, W), dtype=jnp.float32)
    # "target" is what ContentLoss.__init__ detaches and stores; deterministic init.
    target = jax.random.normal(k_tgt, (B, C, H, W), dtype=jnp.float32)

    out, loss = content_loss_forward(x, target)
    out = jax.block_until_ready(out)
    loss = jax.block_until_ready(loss)

    ref_loss = jnp.mean((x - target) ** 2)
    assert jnp.allclose(loss, ref_loss, rtol=1e-6, atol=1e-6), (loss, ref_loss)
    assert jnp.array_equal(out, x)  # identity pass-through

    # Secondary case: shape whose element count is not a multiple of 128,
    # exercising the zero-pad tail path.
    x2 = jax.random.normal(k_in2, (2, 3, 15, 17), dtype=jnp.float32)
    t2 = jax.random.normal(k_tgt2, (2, 3, 15, 17), dtype=jnp.float32)
    out2, loss2 = content_loss_forward(x2, t2)
    loss2 = jax.block_until_ready(loss2)
    ref_loss2 = jnp.mean((x2 - t2) ** 2)
    assert jnp.allclose(loss2, ref_loss2, rtol=1e-6, atol=1e-6), (loss2, ref_loss2)
    assert jnp.array_equal(out2, x2)

    print("KERNEL_OK")
</pallas_src>

<mosaic_0001>
module attributes {stable_mosaic.version = 11 : i64} {
  func.func @_mse_partial_kernel(%arg0: i32, %arg1: i32, %arg2: memref<8x128xf32, #tpu.memory_space<vmem>>, %arg3: memref<8x128xf32, #tpu.memory_space<vmem>>, %arg4: memref<8x128xf32, #tpu.memory_space<vmem>>, %arg5: memref<8x128xf32, #tpu.memory_space<vmem>>) attributes {dimension_semantics = [#tpu.dimension_semantics<parallel>, #tpu.dimension_semantics<arbitrary>], iteration_bounds = array<i64: 2, 1>, scalar_prefetch = 0 : i64, scratch_operands = 1 : i64, tpu.core_type = #tpu.core_type<tc>, window_params = [{transform_indices = @transform_0, window_bounds = array<i64: 8, 128>}, {transform_indices = @transform_1, window_bounds = array<i64: 8, 128>}, {transform_indices = @transform_2, window_bounds = array<i64: 8, 128>}]} {
    %c0_i32 = arith.constant 0 : i32
    %0 = arith.cmpi eq, %arg1, %c0_i32 : i32
    %1 = arith.extui %0 : i1 to i32
    %c0_i32_0 = arith.constant 0 : i32
    %2 = arith.cmpi ne, %1, %c0_i32_0 : i32
    scf.if %2 {
      %cst = arith.constant 0.000000e+00 : f32
      %13 = vector.broadcast %cst : f32 to vector<8x128xf32>
      %c0_10 = arith.constant 0 : index
      %c0_11 = arith.constant 0 : index
      %14 = vector.load %arg5[%c0_10, %c0_11] : memref<8x128xf32, #tpu.memory_space<vmem>>, vector<8x128xf32>
      tpu.vector_store %arg5[%c0_10, %c0_11], %13 {strides = array<i32>} : memref<8x128xf32, #tpu.memory_space<vmem>>, vector<8x128xf32>,
    } else {
    }
    %c0 = arith.constant 0 : index
    %c0_1 = arith.constant 0 : index
    %3 = vector.load %arg2[%c0, %c0_1] : memref<8x128xf32, #tpu.memory_space<vmem>>, vector<8x128xf32>
    %c0_2 = arith.constant 0 : index
    %c0_3 = arith.constant 0 : index
    %4 = vector.load %arg3[%c0_2, %c0_3] : memref<8x128xf32, #tpu.memory_space<vmem>>, vector<8x128xf32>
    %5 = arith.subf %3, %4 : vector<8x128xf32>
    %c0_4 = arith.constant 0 : index
    %c0_5 = arith.constant 0 : index
    %6 = vector.load %arg5[%c0_4, %c0_5] : memref<8x128xf32, #tpu.memory_space<vmem>>, vector<8x128xf32>
    %7 = arith.mulf %5, %5 : vector<8x128xf32>
    %8 = arith.addf %6, %7 : vector<8x128xf32>
    %c0_6 = arith.constant 0 : index
    %c0_7 = arith.constant 0 : index
    %9 = vector.load %arg5[%c0_6, %c0_7] : memref<8x128xf32, #tpu.memory_space<vmem>>, vector<8x128xf32>
    tpu.vector_store %arg5[%c0_6, %c0_7], %8 {strides = array<i32>} : memref<8x128xf32, #tpu.memory_space<vmem>>, vector<8x128xf32>,
    %c0_i32_8 = arith.constant 0 : i32
    %10 = arith.cmpi eq, %arg1, %c0_i32_8 : i32
    %11 = arith.extui %10 : i1 to i32
    %c0_i32_9 = arith.constant 0 : i32
    %12 = arith.cmpi ne, %11, %c0_i32_9 : i32
    scf.if %12 {
      %c0_10 = arith.constant 0 : index
      %c0_11 = arith.constant 0 : index
      %13 = vector.load %arg5[%c0_10, %c0_11] : memref<8x128xf32, #tpu.memory_space<vmem>>, vector<8x128xf32>
      %14 = vector.shape_cast %13 : vector<8x128xf32> to vector<1x8x128xf32>
      %cst = arith.constant dense<0.000000e+00> : vector<1xf32>
      %15 = vector.multi_reduction <add>, %14, %cst [1, 2] : vector<1x8x128xf32> to vector<1xf32>
      %16 = vector.shape_cast %15 : vector<1xf32> to vector<1x1x1xf32>
      %17 = vector.extract %16[0, 0, 0] : f32 from vector<1x1x1xf32>
      %18 = vector.broadcast %17 : f32 to vector<8x128xf32>
      %c0_12 = arith.constant 0 : index
      %c0_13 = arith.constant 0 : index
      %19 = vector.load %arg4[%c0_12, %c0_13] : memref<8x128xf32, #tpu.memory_space<vmem>>, vector<8x128xf32>
      tpu.vector_store %arg4[%c0_12, %c0_13], %18 {strides = array<i32>} : memref<8x128xf32, #tpu.memory_space<vmem>>, vector<8x128xf32>,
    } else {
    }
    return
  }
  func.func @transform_0(%arg0: i32, %arg1: i32) -> (i32, i32) {
    %c1_i32 = arith.constant 1 : i32
    %0 = arith.muli %arg0, %c1_i32 : i32
    %1 = arith.addi %0, %arg1 : i32
    %c0_i32 = arith.constant 0 : i32
    %c0_i32_0 = arith.constant 0 : i32
    return %1, %c0_i32 : i32, i32
  }
  func.func @transform_1(%arg0: i32, %arg1: i32) -> (i32, i32) {
    %c1_i32 = arith.constant 1 : i32
    %0 = arith.muli %arg0, %c1_i32 : i32
    %1 = arith.addi %0, %arg1 : i32
    %c0_i32 = arith.constant 0 : i32
    %c0_i32_0 = arith.constant 0 : i32
    return %1, %c0_i32 : i32, i32
  }
  func.func @transform_2(%arg0: i32, %arg1: i32) -> (i32, i32) {
    %c0_i32 = arith.constant 0 : i32
    %c0_i32_0 = arith.constant 0 : i32
    return %arg0, %c0_i32 : i32, i32
  }
}

</mosaic_0001>

<bundles_post_ra>
// kernel: tpu_custom_call.1
= control target key start
LH: loop header
LB: loop body
LE: loop exit
PB: predicated region body
PF: predicated region fallthrough
CT: control target
= control target key end

     0   :  { %7 = vsyncpa [#allocation4], 0  ;;  %s836_s0 = inlined_call_operand.hbm [shape: f32[16,128], index: 0, kind: input, shape index: {}]   ;;  %s837_s1 = inlined_call_operand.hbm [shape: f32[16,128], index: 1, kind: input, shape index: {}]   ;;  %s838_s2 = inlined_call_operand.hbm [shape: f32[16,128], index: 2, kind: output, shape index: {}]  }
   0x1   :  { %9 = vsyncpa [#allocation4 + $0x1], 0 }
   0x2   :  { %10 = vsyncpa [#allocation7], 0 }
   0x3   :  { %12 = vsyncpa [#allocation7 + $0x1], 0 }
   0x4   :  { %13 = vsyncpa [#allocation5], 0 }
   0x5   :  { %15 = vsyncpa [#allocation5 + $0x1], 0  ;;  %s611_s9 = smov 0   ;;  %s613_s10 = smov 0  }
   0x6   :  { %s615_s11 = smov 0   ;;  %s617_s12 = smov 0  }
   0x7   :  { %s619_s13 = smov 0   ;;  %s621_s14 = smov 0  }
   0x8 LB: > { %s360_s15 = sadd.s32 4294967295, %s591_s14   ;;  %s361_s16 = sadd.s32 4294967294, %s591_s14   ;;  %s591_s14 = sphi %s621_s14, %s21_s14   ;;  %s587_s13 = sphi %s619_s13, %s858_s13   ;;  %s583_s12 = sphi %s617_s12, %s857_s12   ;;  %s579_s11 = sphi %s615_s11, %s856_s11   ;;  %s575_s10 = sphi %s613_s10, %s855_s10   ;;  %s571_s9 = sphi %s611_s9, %s854_s9  }
   0x9   : > { %s33_s17 = sadd.s32 1, %s587_s13  ;;  %s42_s18 = sadd.s32 1, %s579_s11 }
   0xa   : > { %p35_p0 = scmp.ge.s32.totalorder %s33_s17, 2  ;;  %p49_p1 = scmp.ne.s32.totalorder %s579_s11, %s575_s10 }
   0xb   : > { %p50_p2 = scmp.eq.s32.totalorder %s591_s14, 0  ;;  %p55_p3 = scmp.ne.s32.totalorder %s575_s10, %s571_s9 }
   0xc   : > { %s860_s17 = smov (%p35_p0, %s33_s17), 0  ;;  %p56_p5 = scmp.eq.s32.totalorder %s360_s15, 0 }
   0xd   : > { %p652_p4 = por %p50_p2, %p49_p1  ;;  %s39_s20 = ssub.s32 %s587_s13, %s860_s17 }
   0xe   : > { %p107_p6 = scmp.eq.s32.totalorder %s360_s15, 1  ;;  %p40_p7 = scmp.eq.s32.totalorder %s39_s20, 0 }
   0xf   : > { %p658_p8 = por %p56_p5, %p55_p3  ;;  %p113_p10 = scmp.eq.s32.totalorder %s361_s16, 1 }
  0x10   : > { %p662_p9 = por %p107_p6, %p49_p1  ;;  %p395_p13 = scmp.lt.s32.totalorder %s591_s14, 2 }
  0x11   : > { %s842_s21 = scalar_select %p658_p8, 1, 0 }
  0x12   : > { %s843_s22 = scalar_select %p662_p9, 1, 0 }
  0x13   : > { %s667_s23 = scalar_select %p40_p7, %s579_s11, %s42_s18  }
  0x14   : > { %p669_p11 = por %p113_p10, %p55_p3  ;;  %s676_s25 = sand.u32 1, %s579_s11  }
  0x15   : > { %s364_s26 = sshll.u32 %s676_s25, 3  ;;  %s365_s27 = sshll.u32 %s587_s13, 7 }
  0x16   : > { %s844_s24 = scalar_select %p669_p11, 1, 0 }
  0x17   : > { %s685_s30 = scalar_lea.hbm %s836_s0, %s365_s27  ;;  %s137_s3 = scalar_lea.vmem [#allocation3], %s364_s26 }
  0x18   : > { %s145_s4 = sshll.u32 %s137_s3, 4  ;;  %p693_p0 = pnand %p395_p13, %p652_p4  ;;  %s689_s4 = int_to_ptr.vmem [resolvable:$true] %s145_s4 }
  0x19   : > { %s134_s6 = scalar_lea.sflag [#allocation4], %s676_s25  ;;  %s445_s7 = scalar_lea.hbm %s685_s30, 128 }
  0x1a   : > { %p446_p3 = scmp.ne.s32.totalorder %s685_s30, %s445_s7  ;;  %p447_p5 = pneg %p693_p0 }
  0x1b   : > { %s450_s16 = scalar_lea.hbm %s836_s0, 256  ;;  %p451_p4 = scmp.lt.u32.totalorder %s685_s30, %s836_s0 }
  0x1c   : > { %p448_p6 = pnand %p447_p5, %p446_p3  ;;  %p452_p10 = scmp.lt.u32.totalorder %s450_s16, %s445_s7 }
  0x1d   : > { %p454_p12 = scmp.lt.u32.totalorder %s445_s7, %s685_s30 }
  0x1e   : > { %p449_p7 = pneg %p448_p6  ;;  %p453_p13 = por %p452_p10, %p451_p4 }
  0x20   : > { %p455_p1 = por %p454_p12, %p453_p13 }
  0x22   : > { %p456_p2 = pnand %p455_p1, %p449_p7 }
  0x24   : > { %459 = shalt.err (!%p456_p2)
}
  0x25   : > { %s460_s20 = scalar_lea.vmem %s689_s4, 128  ;;  %s593_s28 = smov [#allocation3]  }
  0x26   : > { %p461_p3 = scmp.ne.s32.totalorder %s689_s4, %s460_s20  ;;  %s465_s29 = sshll.u32 %s593_s28, 4  ;;  %s466_s29 = int_to_ptr.vmem [resolvable:$false] %s465_s29 }
  0x27   : > { %s467_s3 = scalar_lea.vmem %s466_s29, 256  ;;  %p468_p9 = scmp.lt.s32.totalorder %s689_s4, %s466_s29 }
  0x28   : > { %p463_p6 = pnand %p461_p3, %p447_p5  ;;  %p469_p4 = scmp.lt.s32.totalorder %s467_s3, %s460_s20 }
  0x2a   : > { %p464_p11 = pneg %p463_p6  ;;  %p470_p10 = por %p469_p4, %p468_p9 }
  0x2c   : > { %p471_p12 = pnand %p470_p10, %p464_p11 }
  0x2e   : > { %474 = shalt.err (!%p471_p12)
}
  0x2f   : > { %387 = dma.hbm_to_vmem [thread:$0]  (!%p693_p0), %s685_s30, 128, %s689_s4, %s134_s6  }
  0x30   : > { %p846_p1 = scmp.lt.s32.totalorder %s591_s14, 3  ;;  %p847_p2 = scmp.ge.s32.totalorder %s591_s14, 1 }
  0x31   : > { %s738_s16 = scalar_lea.hbm %s837_s1, %s365_s27  ;;  %s156_s18 = scalar_lea.vmem [#allocation6], %s364_s26 }
  0x32   : > { %p729_p7 = pnand %p847_p2, %p846_p1  ;;  %s164_s19 = sshll.u32 %s156_s18, 4  ;;  %s165_s19 = int_to_ptr.vmem [resolvable:$true] %s164_s19 }
  0x33   : > { %s153_s30 = scalar_lea.sflag [#allocation7], %s676_s25  ;;  %s475_s4 = scalar_lea.hbm %s738_s16, 128 }
  0x34   : > { %s848_s7 = scalar_select %p729_p7, 1, 0 }
  0x35   : > { %p476_p9 = scmp.ne.s32.totalorder %s738_s16, %s475_s4  ;;  %s480_s27 = scalar_lea.hbm %s837_s1, 256 }
  0x36   : > { %p481_p3 = scmp.lt.u32.totalorder %s738_s16, %s837_s1  ;;  %p482_p6 = scmp.lt.u32.totalorder %s480_s27, %s475_s4 }
  0x37   : > { %p478_p11 = pnand %p476_p9, %p447_p5  ;;  %p484_p10 = scmp.lt.u32.totalorder %s475_s4, %s738_s16 }
  0x38   : > { %p483_p4 = por %p482_p6, %p481_p3 }
  0x39   : > { %p479_p13 = pneg %p478_p11 }
  0x3a   : > { %p485_p12 = por %p484_p10, %p483_p4 }
  0x3c   : > { %p486_p1 = pnand %p485_p12, %p479_p13 }
  0x3e   : > { %489 = shalt.err (!%p486_p1)
}
  0x3f   : > { %s490_s25 = scalar_lea.vmem %s165_s19, 128  ;;  %s594_s26 = smov [#allocation6]  }
  0x40   : > { %p491_p2 = scmp.ne.s32.totalorder %s165_s19, %s490_s25  ;;  %s495_s3 = sshll.u32 %s594_s26, 4  ;;  %s496_s3 = int_to_ptr.vmem [resolvable:$false] %s495_s3 }
  0x41   : > { %s497_s8 = scalar_lea.vmem %s496_s3, 256  ;;  %p498_p8 = scmp.lt.s32.totalorder %s165_s19, %s496_s3 }
  0x42   : > { %p493_p9 = pnand %p491_p2, %p447_p5  ;;  %p499_p7 = scmp.lt.s32.totalorder %s497_s8, %s490_s25 }
  0x44   : > { %p494_p11 = pneg %p493_p9  ;;  %p500_p3 = por %p499_p7, %p498_p8 }
  0x46   : > { %p501_p6 = pnand %p500_p3, %p494_p11 }
  0x48   : > { %504 = shalt.err (!%p501_p6)
}
  0x49   : > { %390 = dma.hbm_to_vmem [thread:$0]  (!%p693_p0), %s738_s16, 128, %s165_s19, %s153_s30  }
  0x4a   : > { %p849_p13 = scmp.ne.s32.totalorder %s848_s7, 0 }
  0x4b   : > { %s765_s15 = sand.u32 (!%p849_p13), 1, %s575_s10   ;;  %p850_p8 = scmp.ne.s32.totalorder (!%p849_p13), %s842_s21, 0 }
  0x4c   : > { %173 = sbr.rel (%p849_p13) target bundleno = 310 (0x136), region = 28  ;;  %s768_s18 = sshll.u32 (!%p849_p13), %s765_s15, 3 }
  0x4d   : > { %s176_s4 = scalar_lea.sflag (!%p849_p13), [#allocation4], %s765_s15  ;;  %s179_s6 = scalar_lea.vmem (!%p849_p13), [#allocation3], %s768_s18 }
  0x53   : > { %558 = dma.done.wait (%p850_p8), %s176_s4, 128  }
  0x54   : > { %560 = vsyncadd (%p850_p8), %s176_s4, 4294967168  ;;  %s185_s5 = scalar_lea.sflag [#allocation7], %s765_s15  ;;  %s188_s7 = scalar_lea.vmem [#allocation6], %s768_s18 }
  0x55   : > { %562 = dma.done.wait (%p850_p8), %s185_s5, 128  }
  0x56   : > { %564 = vsyncadd (%p850_p8), %s185_s5, 4294967168  ;;  %v221_v0 = vld [vmem:[%s179_s6] sm:$0xff]  ;;  %v222_v1 = vld [vmem:[%s188_s7] sm:$0xff]  ;;  %s213_s16 = scalar_lea.vmem [#allocation8], %s768_s18  ;;  %s373_s19 = sshll.u32 %s583_s12, 7 }
  0x57   : > { %v223_v2 = vsub.f32 %v221_v0, %v222_v1  ;;  %s257_s21 = sshll.u32 %s213_s16, 4  ;;  %s789_s28 = scalar_lea.hbm %s838_s2, %s373_s19  ;;  %s784_s21 = int_to_ptr.vmem [resolvable:$true] %s257_s21 }
  0x58   : > { %s244_s29 = scalar_lea.sflag [#allocation5], %s765_s15  ;;  %s505_s25 = scalar_lea.vmem %s784_s21, 128 }
  0x59   : > { %v225_v3 = vmul.f32 %v223_v2, %v223_v2  ;;  %p506_p0 = scmp.ne.s32.totalorder %s784_s21, %s505_s25  ;;  %p851_p5 = scmp.ne.s32.totalorder %s843_s22, 0 }
  0x5a   : > { %s595_s12 = smov [#allocation8]  }
  0x5b   : > { %232 = vadd.xlane.f32.xlu0 %v225_v3  ;;  %p507_p7 = pnand %p506_p0, %p851_p5  ;;  %s509_s26 = sshll.u32 %s595_s12, 4  ;;  %s510_s26 = int_to_ptr.vmem [resolvable:$false] %s509_s26 }
  0x5c   : > { %s511_s3 = scalar_lea.vmem %s510_s26, 256  ;;  %p512_p10 = scmp.lt.s32.totalorder %s784_s21, %s510_s26 }
  0x5d   : > { %p508_p4 = pneg %p507_p7  ;;  %p513_p12 = scmp.lt.s32.totalorder %s511_s3, %s505_s25 }
  0x5f   : > { %p514_p1 = por %p513_p12, %p512_p10 }
  0x61   : > { %p515_p2 = pnand %p514_p1, %p508_p4 }
  0xe8   : > { %v233_v4 = vpop.xlane.xlu0 %232 }
  0xe9   : > { %v234_v5 = vrot.slane %v233_v4, 4 }
  0xeb   : > { %v235_v6 = vadd.f32 %v234_v5, %v233_v4 }
  0xed   : > { %v236_v7 = vrot.slane %v235_v6, 2 }
  0xef   : > { %v237_v8 = vadd.f32 %v236_v7, %v235_v6 }
  0xf1   : > { %v238_v9 = vrot.slane %v237_v8, 1 }
  0xf3   : > { %v239_v10 = vadd.f32 %v238_v9, %v237_v8 }
  0xf5   : > { %376 = vpush %v239_v10 }
 0x126   : > { %s377_s30 = spop %376 }
 0x127   : > { %v241_v11 = vstv %s377_s30 }
 0x128   : > { %242 = vst [vmem:[%s213_s16] sm:$0xff] %v241_v11 }
 0x129   : > { %518 = shalt.err (!%p515_p2)
}
 0x12a   : > { %s519_s8 = scalar_lea.hbm %s789_s28, 128  ;;  %s523_s4 = scalar_lea.hbm %s838_s2, 256 }
 0x12b   : > { %p520_p9 = scmp.ne.s32.totalorder %s789_s28, %s519_s8  ;;  %p524_p6 = scmp.lt.u32.totalorder %s789_s28, %s838_s2 }
 0x12c   : > { %p525_p13 = scmp.lt.u32.totalorder %s523_s4, %s519_s8  ;;  %p527_p0 = scmp.lt.u32.totalorder %s519_s8, %s789_s28 }
 0x12d   : > { %p521_p11 = pnand %p520_p9, %p851_p5 }
 0x12e   : > { %p526_p8 = por %p525_p13, %p524_p6 }
 0x12f   : > { %p522_p3 = pneg %p521_p11 }
 0x130   : > { %p528_p7 = por %p527_p0, %p526_p8 }
 0x132   : > { %p529_p4 = pnand %p528_p7, %p522_p3 }
 0x134   : > { %532 = shalt.err (!%p529_p4)
}
 0x135   : > { %382 = dma.vmem_to_hbm [thread:$0]  (%p851_p5), %s784_s21, 128, %s789_s28, %s244_s29  }
 0x136 PF: > { %s269_s7 = sand.u32 1, %s571_s9   ;;  %p852_p10 = scmp.ne.s32.totalorder %s844_s24, 0 }
 0x137   : > { %p853_p12 = scmp.ge.s32.totalorder %s591_s14, 2  ;;  %s270_s16 = scalar_lea.sflag [#allocation5], %s269_s7 }
 0x139   : > { %p392_p1 = pnand %p853_p12, %p852_p10 }
 0x13b   : > { %566 = dma.done.wait (!%p392_p1), %s270_s16, 128  }
 0x13c   : > { %568 = vsyncadd (!%p392_p1), %s270_s16, 4294967168  ;;  %s21_s14 = sadd.s32 1, %s591_s14   ;;  %s854_s9 = smov %s575_s10 }
 0x13d   : > { %p18_p2 = scmp.ge.s32.totalorder %s21_s14, 4   ;;  %s855_s10 = smov %s579_s11 }
 0x13e   : > { %s856_s11 = smov %s667_s23  ;;  %s857_s12 = smov %s587_s13 }
 0x13f   : > { %s858_s13 = smov %s860_s17  ;;  %20 = sbr.rel (!%p18_p2) target bundleno = 8 (0x8), region = 94 }
 0x146   :  { %275 = vsyncpa [#allocation4], 1 }
 0x147   :  { %277 = vsyncpa [#allocation4 + $0x1], 1 }
 0x148   :  { %278 = vsyncpa [#allocation7], 1 }
 0x149   :  { %280 = vsyncpa [#allocation7 + $0x1], 1 }
 0x14a   :  { %281 = vsyncpa [#allocation5], 1 }
 0x14b   :  { %283 = vsyncpa [#allocation5 + $0x1], 1 }

</bundles_post_ra>
